<compile_context>
chip_gen: v7x
topology: tpu7x:2x2x1
jax: 0.10.0
libtpu: 0.0.40
codegen_flags: <defaults>
</compile_context>

<pallas_src>
import jax
import jax.numpy as jnp
from jax.experimental import pallas as pl
from jax.experimental.pallas import tpu as pltpu


def _round_up(v, m):
    return ((v + m - 1) // m) * m


def _patch_embed_kernel(x_ref, w_ref, b_ref, o_ref):
    # x_ref: (tile_m, C)   [compute dtype, e.g. bf16]
    # w_ref: (C, tile_e)   [compute dtype]  (pre-transposed weight)
    # b_ref: (1, tile_e)   [f32]
    # o_ref: (tile_m, tile_e)
    acc = jnp.dot(x_ref[...], w_ref[...], preferred_element_type=jnp.float32)
    acc = acc + b_ref[...].astype(jnp.float32)   # broadcast bias over rows
    o_ref[...] = acc.astype(o_ref.dtype)


def patch_embedding_3d(x, weight, bias, *,
                       compute_dtype=jnp.bfloat16,
                       vmem_budget_bytes=24 * 1024 * 1024,
                       vmem_limit_bytes=48 * 1024 * 1024):
    """x: (B, T, C); weight: (E, C); bias: (E,). Returns (B, T, E) in x.dtype."""
    assert x.ndim == 3
    B, T, C = x.shape
    E = weight.shape[0]
    assert weight.shape == (E, C)
    assert bias.shape == (E,)

    M = B * T
    in_bytes = jnp.dtype(compute_dtype).itemsize
    out_bytes = jnp.dtype(x.dtype).itemsize
    # Sublane alignment for the row (M) tile: 16 covers bf16 packing, 8 for f32.
    row_align = 16 if in_bytes < 4 else 8

    # --- Lane-dense embed dim: pad E to a multiple of 128 (zeros contribute
    # nothing; the padded output columns are sliced off afterwards). ---
    E_pad = _round_up(E, 128)
    # Keep the whole (padded) embed dim in one tile when modest; otherwise tile
    # it so the resident weight block stays small (v7x has only 64 MiB VMEM).
    tile_e = E_pad if E_pad <= 1024 else 512
    grid_e = pl.cdiv(E_pad, tile_e)

    # --- tile_m from a VMEM working-set budget ---
    # Conservatively assume the weight block gets 2 buffers even though its
    # index_map is constant over the inner M loop (so it is not re-DMA'd).
    w_bytes = 2 * C * tile_e * in_bytes
    per_row = 2 * (C * in_bytes + tile_e * out_bytes)   # double-buffered x + out
    tile_m = (vmem_budget_bytes - w_bytes) // per_row
    tile_m = max(row_align, min(1024, (tile_m // row_align) * row_align))
    if M <= tile_m:
        # Avoid a degenerate 1-step grid where possible: >=2 steps gives
        # DMA/compute overlap and lets v7x shard the M axis across its 2 TCs.
        tile_m = max(row_align, _round_up(pl.cdiv(M, 4), row_align))
    grid_m = pl.cdiv(M, tile_m)

    # --- Wrapper-side operand prep (cast, transpose once, pad E) ---
    x2d = x.reshape(M, C).astype(compute_dtype)
    wt = jnp.transpose(weight).astype(compute_dtype)          # (C, E)
    if E_pad != E:
        wt = jnp.pad(wt, ((0, 0), (0, E_pad - E)))
        b2d = jnp.pad(bias.astype(jnp.float32), (0, E_pad - E)).reshape(1, E_pad)
    else:
        b2d = bias.astype(jnp.float32).reshape(1, E_pad)

    cost = pl.CostEstimate(
        flops=2 * M * C * E_pad,
        transcendentals=0,
        bytes_accessed=(M * C * in_bytes + C * E_pad * in_bytes
                        + E_pad * 4 + M * E_pad * out_bytes),
    )

    out2d = pl.pallas_call(
        _patch_embed_kernel,
        out_shape=jax.ShapeDtypeStruct((M, E_pad), x.dtype),
        grid_spec=pltpu.PrefetchScalarGridSpec(
            num_scalar_prefetch=0,
            # E-tiles outer, M-tiles inner: weight/bias blocks are constant over
            # the inner M stream -> stay VMEM-resident, no re-DMA per step.
            grid=(grid_e, grid_m),
            in_specs=[
                pl.BlockSpec((tile_m, C), lambda e, i: (i, 0)),     # x streams over M
                pl.BlockSpec((C, tile_e), lambda e, i: (0, e)),     # resident weight tile
                pl.BlockSpec((1, tile_e), lambda e, i: (0, e)),     # resident bias tile
            ],
            out_specs=pl.BlockSpec((tile_m, tile_e), lambda e, i: (i, e)),
        ),
        compiler_params=pltpu.CompilerParams(
            dimension_semantics=("parallel", "parallel"),   # megacore on v7x
            vmem_limit_bytes=vmem_limit_bytes,
        ),
        cost_estimate=cost,
    )(x2d, wt, b2d)

    if E_pad != E:
        out2d = out2d[:, :E]
    return out2d.reshape(B, T, E)


if __name__ == "__main__":
    # Small shapes consistent with the module's forward: x is (B, T, C).
    B, T = 2, 8
    in_channels = 16
    embed_size = 32

    key = jax.random.PRNGKey(0)
    kx, kw, kb = jax.random.split(key, 3)

    x = jax.random.normal(kx, (B, T, in_channels), dtype=jnp.float32)
    # Deterministic "Linear" parameters (same shapes as nn.Linear(in, embed)).
    bound = 1.0 / (in_channels ** 0.5)
    weight = jax.random.uniform(
        kw, (embed_size, in_channels), minval=-bound, maxval=bound,
        dtype=jnp.float32)
    bias = jax.random.uniform(
        kb, (embed_size,), minval=-bound, maxval=bound, dtype=jnp.float32)

    out = jax.jit(patch_embedding_3d)(x, weight, bias)
    out = jax.block_until_ready(out)
    assert out.shape == (B, T, embed_size)

    # Tight check: same math with identically bf16-rounded inputs, f32 accumulate.
    xb = x.astype(jnp.bfloat16).astype(jnp.float32)
    wb = weight.astype(jnp.bfloat16).astype(jnp.float32)
    ref_bf16 = jnp.einsum("btc,ec->bte", xb, wb,
                          precision=jax.lax.Precision.HIGHEST) + bias
    assert jnp.allclose(out, ref_bf16, atol=1e-5, rtol=1e-5)

    # Loose check vs. strict f32 nn.Linear numerics (bf16 input rounding only).
    ref_f32 = jnp.einsum("btc,ec->bte", x, weight,
                         precision=jax.lax.Precision.HIGHEST) + bias
    assert jnp.allclose(out, ref_f32, atol=3e-2, rtol=3e-2)

    print("KERNEL_OK")
</pallas_src>

<mosaic_0001>
module attributes {stable_mosaic.version = 11 : i64} {
  func.func @_patch_embed_kernel(%arg0: i32, %arg1: i32, %arg2: memref<16x16xbf16, #tpu.memory_space<vmem>>, %arg3: memref<16x128xbf16, #tpu.memory_space<vmem>>, %arg4: memref<1x128xf32, #tpu.memory_space<vmem>>, %arg5: memref<16x128xf32, #tpu.memory_space<vmem>>) attributes {dimension_semantics = [#tpu.dimension_semantics<parallel>, #tpu.dimension_semantics<parallel>], iteration_bounds = array<i64: 1, 1>, scalar_prefetch = 0 : i64, scratch_operands = 0 : i64, tpu.core_type = #tpu.core_type<tc>, window_params = [{transform_indices = @transform_0, window_bounds = array<i64: 16, 16>}, {transform_indices = @transform_1, window_bounds = array<i64: 16, 128>}, {transform_indices = @transform_2, window_bounds = array<i64: 1, 128>}, {transform_indices = @transform_3, window_bounds = array<i64: 16, 128>}]} {
    %c0 = arith.constant 0 : index
    %c0_0 = arith.constant 0 : index
    %0 = vector.load %arg2[%c0, %c0_0] : memref<16x16xbf16, #tpu.memory_space<vmem>>, vector<16x16xbf16>
    %c0_1 = arith.constant 0 : index
    %c0_2 = arith.constant 0 : index
    %1 = vector.load %arg3[%c0_1, %c0_2] : memref<16x128xbf16, #tpu.memory_space<vmem>>, vector<16x128xbf16>
    %cst = arith.constant dense<0.000000e+00> : vector<16x128xf32>
    %2 = tpu.matmul %0, %1, %cst {dimension_numbers = #tpu.dot_dimension_numbers<[1], [0], [0], [1], [0, 0, 1, 1], [], []>} : vector<16x16xbf16>, vector<16x128xbf16>, vector<16x128xf32> -> vector<16x128xf32>
    %c0_3 = arith.constant 0 : index
    %c0_4 = arith.constant 0 : index
    %3 = vector.load %arg4[%c0_3, %c0_4] : memref<1x128xf32, #tpu.memory_space<vmem>>, vector<1x128xf32>
    %4 = vector.broadcast %3 : vector<1x128xf32> to vector<16x128xf32>
    %5 = arith.addf %2, %4 : vector<16x128xf32>
    %c0_5 = arith.constant 0 : index
    %c0_6 = arith.constant 0 : index
    %6 = vector.load %arg5[%c0_5, %c0_6] : memref<16x128xf32, #tpu.memory_space<vmem>>, vector<16x128xf32>
    tpu.vector_store %arg5[%c0_5, %c0_6], %5 {strides = array<i32>} : memref<16x128xf32, #tpu.memory_space<vmem>>, vector<16x128xf32>,
    return
  }
  func.func @transform_0(%arg0: i32, %arg1: i32) -> (i32, i32) {
    %c0_i32 = arith.constant 0 : i32
    %c0_i32_0 = arith.constant 0 : i32
    return %arg1, %c0_i32 : i32, i32
  }
  func.func @transform_1(%arg0: i32, %arg1: i32) -> (i32, i32) {
    %c0_i32 = arith.constant 0 : i32
    %c0_i32_0 = arith.constant 0 : i32
    return %c0_i32, %arg0 : i32, i32
  }
  func.func @transform_2(%arg0: i32, %arg1: i32) -> (i32, i32) {
    %c0_i32 = arith.constant 0 : i32
    %c0_i32_0 = arith.constant 0 : i32
    return %c0_i32, %arg0 : i32, i32
  }
  func.func @transform_3(%arg0: i32, %arg1: i32) -> (i32, i32) {
    %c0_i32 = arith.constant 0 : i32
    return %arg1, %arg0 : i32, i32
  }
}

</mosaic_0001>

<bundles_post_ra>
// kernel: patch_embedding_3d.1
= control target key start
LH: loop header
LB: loop body
LE: loop exit
PB: predicated region body
PF: predicated region fallthrough
CT: control target
= control target key end

     0   :  { %v104_v0 = vmov 0.0   ;;  %vm105_vm0 = vmmov 0   ;;  %vm37_vm1 = vcmask 130048   ;;  %s141_s1 = inlined_call_operand.vmem [shape: bf16[16,128], index: 1, kind: input, shape index: {}]   ;;  %s142_s0 = inlined_call_operand.vmem [shape: bf16[16,16], index: 0, kind: input, shape index: {}]   ;;  %s143_s2 = inlined_call_operand.vmem [shape: f32[1,128], index: 2, kind: input, shape index: {}]   ;;  %s144_s3 = inlined_call_operand.vmem [shape: f32[16,128], index: 3, kind: output, shape index: {}]  }
   0x1   :  { %94 = vmatprep.subr.bf16.mxu0 %v104_v0  ;;  %v102_v1 = vld [vmem:[%s141_s1] sm:$0xff]   ;;  %96 = vmatprep.mubr.msk.bf16.mxu0 %vm105_vm0, %v104_v0 }
   0x2   :  { %v103_v2 = vld [vmem:[%s142_s0] sm:$0xff]   ;;  %95 = vmatpush3.bf16.msra.mxu0 %v102_v1 }
   0x3   :  { %v88_v3 = vld [vmem:[%s143_s2] ss:$0 sm:$0xff] }
   0x5   :  { %97 = vmatmul.mubr.msk.bf16.vlgmr.msra.gmra.mrb[0].mxu0 %vm37_vm1, %v103_v2 }
  0xd8   :  { %v75_v4 = vpop.f32.mrb[0].mxu0 }
  0xd9   :  { %v76_v5 = vadd.f32 %v88_v3, %v75_v4  ;;  %v98_v6 = vpop.f32.mrb[1].mxu0 }
  0xda   :  { %v78_v7 = vpop.f32.mrb[2].mxu0 }
  0xdb   :  { %82 = vst [vmem:[%s144_s3] sm:$0xff] %v76_v5  ;;  %v79_v8 = vadd.f32 %v88_v3, %v78_v7  ;;  %v99_v9 = vpop.f32.mrb[3].mxu0 }
  0xdd   :  { %83 = vst [vmem:[%s144_s3 + $0x8] sm:$0xff] %v79_v8 }

</bundles_post_ra>
